<compile_context>
chip_gen: v5e
topology: v5e:2x2
jax: 0.10.0
libtpu: 0.0.40
codegen_flags: <defaults>
</compile_context>

<pallas_src>
import functools

import numpy as np
import jax
import jax.numpy as jnp
from jax.experimental import pallas as pl
from jax.experimental.pallas import tpu as pltpu


N_ALIGN = 256    # pad node count to MXU-friendly multiples (M/K dims of matmuls)
LANE = 128       # feature dims pad to 128, or 256 when the true dim exceeds 128


def _round_up(x, m):
    return ((x + m - 1) // m) * m


def _pad2d(a, rows, cols):
    r, c = a.shape
    return jnp.pad(a, ((0, rows - r), (0, cols - c)))


# ----------------------------------------------------------------------------
# Fused GCN-stack kernel.  grid = (num_layers,), features resident in the
# output VMEM block (constant block index) across layers.
# Kernel args: (scalar-prefetch relu flags, inputs..., output).
# ----------------------------------------------------------------------------
def _gcn_stack_kernel(relu_ref, a_hat_ref, wcat_ref, b_ref, x_ref, o_ref, *,
                      d_pad, compute_dtype):
    l = pl.program_id(0)

    # Layer 0: seed the resident (carried) output block with the input features.
    @pl.when(l == 0)
    def _():
        o_ref[...] = x_ref[...]

    h = o_ref[...]                      # (N_pad, D_pad) f32, carried across layers
    wcat = wcat_ref[0]                  # (D_pad, 2*D_pad) = [W | Wres_eff], compute dtype

    # One MXU call covers both the fc and the residual projection.
    fused = jnp.dot(h.astype(compute_dtype), wcat,
                    preferred_element_type=jnp.float32)    # (N_pad, 2*D_pad) f32 acc
    f = fused[:, :d_pad] + b_ref[0]                        # fc output + bias (f32)
    res = fused[:, d_pad:]                                 # residual term (f32)

    # Aggregation with the pre-normalized adjacency:
    #   agg = D_dst^-1/2 A^T D_src^-1/2 @ (X W + b) + residual
    agg = jnp.dot(a_hat_ref[...], f.astype(compute_dtype),
                  preferred_element_type=jnp.float32) + res

    # Branchless activation: threshold 0 for relu layers, -inf for the last.
    thr = jnp.where(relu_ref[l] > 0, 0.0, -jnp.inf).astype(jnp.float32)
    o_ref[...] = jnp.maximum(agg, thr)


def gcn_forward_fused(layers, adj, x, *, compute_dtype=jnp.bfloat16):
    """Full GCN forward as one fused pallas_call.  adj[src, dst] = 1.0 per edge."""
    n, in_dim = x.shape
    num_layers = len(layers)
    out_dim = layers[-1]["w"].shape[1]

    dims = [in_dim] + [lyr["w"].shape[1] for lyr in layers]
    max_dim = max(dims)
    d_pad = _round_up(max_dim, LANE if max_dim <= LANE else 2 * LANE)
    n_pad = _round_up(n, N_ALIGN)

    # Pre-normalized adjacency (layer-invariant): A_hat[dst, src], then cast to
    # the MXU compute dtype once in the wrapper (no per-layer VPU cast).
    out_degs = jnp.maximum(adj.sum(axis=1), 1.0)          # out-degree per src node
    in_degs = jnp.maximum(adj.sum(axis=0), 1.0)           # in-degree per dst node
    src_norm = out_degs ** -0.5
    dst_norm = in_degs ** -0.5
    a_hat = adj.T * src_norm[None, :] * dst_norm[:, None]
    a_hat = _pad2d(a_hat, n_pad, n_pad).astype(compute_dtype)

    x_pad = _pad2d(x, n_pad, d_pad)                       # f32, aliased to the output

    # Pack per-layer [W | Wres_eff] (compute dtype), bias (f32), relu flag.
    wcats, biases, relu_flags = [], [], []
    for lyr in layers:
        din, dout = lyr["w"].shape
        w_p = _pad2d(lyr["w"], d_pad, d_pad)
        if lyr["res_mode"] == "linear":
            wres = _pad2d(lyr["wres"], d_pad, d_pad)
        elif lyr["res_mode"] == "identity":
            wres = _pad2d(jnp.eye(din, dtype=jnp.float32), d_pad, d_pad)
        else:  # "none"
            wres = jnp.zeros((d_pad, d_pad), jnp.float32)
        wcats.append(jnp.concatenate([w_p, wres], axis=1))      # (D_pad, 2*D_pad)
        biases.append(_pad2d(lyr["b"], 1, d_pad))                # (1, D_pad)
        relu_flags.append(1 if lyr["apply_relu"] else 0)

    w_cat = jnp.stack(wcats).astype(compute_dtype)        # (L, D_pad, 2*D_pad)
    b_all = jnp.stack(biases)                             # (L, 1, D_pad) f32
    relu_flags = jnp.asarray(relu_flags, jnp.int32)       # (L,)

    kernel = functools.partial(_gcn_stack_kernel, d_pad=d_pad,
                               compute_dtype=compute_dtype)

    grid_spec = pltpu.PrefetchScalarGridSpec(
        num_scalar_prefetch=1,                # relu flags -> SMEM
        grid=(num_layers,),
        in_specs=[
            # A_hat: constant block index -> resident; single-buffered.
            pl.BlockSpec((n_pad, n_pad), lambda l, flags: (0, 0),
                         pipeline_mode=pl.Buffered(1)),
            # per-layer packed weights and bias (pipelined over the layer axis).
            pl.BlockSpec((1, d_pad, 2 * d_pad), lambda l, flags: (l, 0, 0)),
            pl.BlockSpec((1, 1, d_pad), lambda l, flags: (l, 0, 0)),
            # input features (read only at layer 0); single-buffered.
            pl.BlockSpec((n_pad, d_pad), lambda l, flags: (0, 0),
                         pipeline_mode=pl.Buffered(1)),
        ],
        out_specs=pl.BlockSpec((n_pad, d_pad), lambda l, flags: (0, 0)),
    )

    # Explicit scoped-VMEM budget: resident A_hat + x + carried output block
    # + double-buffered per-layer weights, with headroom; capped for v7x.
    cbytes = np.dtype(compute_dtype).itemsize
    vmem_need = (n_pad * n_pad * cbytes                 # A_hat (single buffer)
                 + n_pad * d_pad * 4                    # x (single buffer)
                 + 2 * n_pad * d_pad * 4                # output block
                 + 2 * d_pad * (2 * d_pad) * cbytes     # packed weights
                 + 2 * d_pad * 4)                       # bias
    vmem_limit = int(min(max(2 * vmem_need + (4 << 20), 32 << 20), 64 << 20))

    out_pad = pl.pallas_call(
        kernel,
        out_shape=jax.ShapeDtypeStruct((n_pad, d_pad), jnp.float32),
        grid_spec=grid_spec,
        # flat input order: relu_flags(0), a_hat(1), w_cat(2), b_all(3), x_pad(4)
        input_output_aliases={4: 0},
        compiler_params=pltpu.CompilerParams(
            dimension_semantics=("arbitrary",),     # layer axis is sequential
            vmem_limit_bytes=vmem_limit),
    )(relu_flags, a_hat, w_cat, b_all, x_pad)

    return out_pad[:n, :out_dim]   # self.head / final slicing; head = Identity


# ----------------------------------------------------------------------------
# Parameter setup (mirrors GraphConv stack with residual=True, norm=None, no MoE)
# ----------------------------------------------------------------------------
def init_linear(key, in_dim, out_dim, bias=True):
    """Deterministic nn.Linear-style init: U(-1/sqrt(in), 1/sqrt(in))."""
    kw, kb = jax.random.split(key)
    bound = 1.0 / jnp.sqrt(jnp.float32(in_dim))
    w = jax.random.uniform(kw, (in_dim, out_dim), jnp.float32, -bound, bound)
    if bias:
        b = jax.random.uniform(kb, (1, out_dim), jnp.float32, -bound, bound)
        return w, b
    return w, None


def build_gcn_params(key, in_dim, num_hidden, out_dim, num_layers):
    layers = []
    if num_layers == 1:
        dims = [(in_dim, out_dim, False, False)]
    else:
        dims = [(in_dim, num_hidden, True, True)]
        for _ in range(1, num_layers - 1):
            dims.append((num_hidden, num_hidden, True, True))
        dims.append((num_hidden, out_dim, False, False))

    for (din, dout, residual, relu) in dims:
        key, kfc, kres = jax.random.split(key, 3)
        w, b = init_linear(kfc, din, dout, bias=True)
        if residual:
            if din != dout:
                wres, _ = init_linear(kres, din, dout, bias=False)
                res_mode = "linear"
            else:
                wres, res_mode = None, "identity"
        else:
            wres, res_mode = None, "none"
        layers.append(dict(w=w, b=b, wres=wres, res_mode=res_mode,
                           apply_relu=relu))
    return layers


def gcn_reference(layers, adj, x):
    """Pure-JAX reference for correctness checking."""
    out_degs = jnp.maximum(adj.sum(axis=1), 1.0)
    in_degs = jnp.maximum(adj.sum(axis=0), 1.0)
    src_norm = (out_degs ** -0.5)[:, None]
    dst_norm = (in_degs ** -0.5)[:, None]
    h = x
    for lyr in layers:
        f = h @ lyr["w"] + lyr["b"]
        f = f * src_norm
        agg = adj.T @ f
        agg = agg * dst_norm
        if lyr["res_mode"] == "linear":
            agg = agg + h @ lyr["wres"]
        elif lyr["res_mode"] == "identity":
            agg = agg + h
        if lyr["apply_relu"]:
            agg = jnp.maximum(agg, 0.0)
        h = agg
    return h


if __name__ == "__main__":
    key = jax.random.PRNGKey(0)

    # Small synthetic graph / feature sizes.
    N = 16
    IN_DIM = 16
    NUM_HIDDEN = 32
    OUT_DIM = 8
    NUM_LAYERS = 2

    k_feat, k_adj, k_params = jax.random.split(key, 3)

    x = jax.random.normal(k_feat, (N, IN_DIM), jnp.float32)

    # Random directed graph with self-loops, dense adjacency adj[src, dst].
    adj = (jax.random.uniform(k_adj, (N, N)) < 0.25).astype(jnp.float32)
    adj = jnp.maximum(adj, jnp.eye(N, dtype=jnp.float32))

    layers = build_gcn_params(k_params, IN_DIM, NUM_HIDDEN, OUT_DIM, NUM_LAYERS)

    ref = gcn_reference(layers, adj, x)

    # f32 path: strict check against the pure-JAX reference.
    out_f32 = gcn_forward_fused(layers, adj, x, compute_dtype=jnp.float32)
    out_f32 = jax.block_until_ready(out_f32)
    assert out_f32.shape == (N, OUT_DIM)
    assert jnp.allclose(out_f32, ref, atol=1e-4, rtol=1e-4), "f32 mismatch vs reference"

    # Default bf16 MXU-input path (f32 accumulation, f32 elementwise): loose check.
    out_bf16 = gcn_forward_fused(layers, adj, x)
    out_bf16 = jax.block_until_ready(out_bf16)
    assert out_bf16.shape == (N, OUT_DIM)
    assert jnp.allclose(out_bf16, ref, atol=1e-1, rtol=1e-1), "bf16 mismatch vs reference"

    # TODO(synk): MoE (SSLfmoefy) expert routing and the optional norm layer are
    # not implemented (module defaults moe=False, norm=None).
    print("KERNEL_OK")
</pallas_src>

<mosaic_0001>
module attributes {stable_mosaic.version = 11 : i64} {
  func.func @_gcn_stack_kernel(%arg0: i32, %arg1: memref<2xi32, #tpu.memory_space<smem>>, %arg2: memref<256x256xf32, #tpu.memory_space<vmem>>, %arg3: memref<1x128x256xf32, #tpu.memory_space<vmem>>, %arg4: memref<1x1x128xf32, #tpu.memory_space<vmem>>, %arg5: memref<256x128xf32, #tpu.memory_space<vmem>>, %arg6: memref<256x128xf32, #tpu.memory_space<vmem>>) attributes {dimension_semantics = [#tpu.dimension_semantics<arbitrary>], iteration_bounds = array<i64: 2>, scalar_prefetch = 1 : i64, scratch_operands = 0 : i64, tpu.core_type = #tpu.core_type<tc>, window_params = [{pipeline_mode = #tpu.pipeline_mode<synchronous>, transform_indices = @transform_0, window_bounds = array<i64: 256, 256>}, {transform_indices = @transform_1, window_bounds = array<i64: 1, 128, 256>}, {transform_indices = @transform_2, window_bounds = array<i64: 1, 1, 128>}, {pipeline_mode = #tpu.pipeline_mode<synchronous>, transform_indices = @transform_3, window_bounds = array<i64: 256, 128>}, {pipeline_mode = #tpu.pipeline_mode<synchronous>, transform_indices = @transform_4, window_bounds = array<i64: 256, 128>}]} {
    %c0_i32 = arith.constant 0 : i32
    %0 = arith.cmpi eq, %arg0, %c0_i32 : i32
    %1 = arith.extui %0 : i1 to i32
    %c0_i32_0 = arith.constant 0 : i32
    %2 = arith.cmpi ne, %1, %c0_i32_0 : i32
    scf.if %2 {
      %c0_16 = arith.constant 0 : index
      %c0_17 = arith.constant 0 : index
      %23 = vector.load %arg5[%c0_16, %c0_17] : memref<256x128xf32, #tpu.memory_space<vmem>>, vector<256x128xf32>
      %c0_18 = arith.constant 0 : index
      %c0_19 = arith.constant 0 : index
      %24 = vector.load %arg6[%c0_18, %c0_19] : memref<256x128xf32, #tpu.memory_space<vmem>>, vector<256x128xf32>
      tpu.vector_store %arg6[%c0_18, %c0_19], %23 {strides = array<i32>} : memref<256x128xf32, #tpu.memory_space<vmem>>, vector<256x128xf32>,
    } else {
    }
    %c0 = arith.constant 0 : index
    %c0_1 = arith.constant 0 : index
    %3 = vector.load %arg6[%c0, %c0_1] : memref<256x128xf32, #tpu.memory_space<vmem>>, vector<256x128xf32>
    %c0_2 = arith.constant 0 : index
    %c0_3 = arith.constant 0 : index
    %c0_4 = arith.constant 0 : index
    %4 = vector.load %arg3[%c0_2, %c0_3, %c0_4] : memref<1x128x256xf32, #tpu.memory_space<vmem>>, vector<1x128x256xf32>
    %5 = vector.shape_cast %4 : vector<1x128x256xf32> to vector<128x256xf32>
    %cst = arith.constant dense<0.000000e+00> : vector<256x256xf32>
    %6 = tpu.matmul %3, %5, %cst {dimension_numbers = #tpu.dot_dimension_numbers<[1], [0], [0], [1], [0, 0, 1, 1], [], []>} : vector<256x128xf32>, vector<128x256xf32>, vector<256x256xf32> -> vector<256x256xf32>
    %7 = vector.extract_strided_slice %6 {offsets = [0, 0], sizes = [256, 128], strides = [1, 1]} : vector<256x256xf32> to vector<256x128xf32>
    %c0_5 = arith.constant 0 : index
    %c0_6 = arith.constant 0 : index
    %c0_7 = arith.constant 0 : index
    %8 = vector.load %arg4[%c0_5, %c0_6, %c0_7] : memref<1x1x128xf32, #tpu.memory_space<vmem>>, vector<1x1x128xf32>
    %9 = vector.shape_cast %8 : vector<1x1x128xf32> to vector<1x128xf32>
    %10 = vector.broadcast %9 : vector<1x128xf32> to vector<256x128xf32>
    %11 = arith.addf %7, %10 : vector<256x128xf32>
    %12 = vector.extract_strided_slice %6 {offsets = [0, 128], sizes = [256, 128], strides = [1, 1]} : vector<256x256xf32> to vector<256x128xf32>
    %c0_8 = arith.constant 0 : index
    %c0_9 = arith.constant 0 : index
    %13 = vector.load %arg2[%c0_8, %c0_9] : memref<256x256xf32, #tpu.memory_space<vmem>>, vector<256x256xf32>
    %cst_10 = arith.constant dense<0.000000e+00> : vector<256x128xf32>
    %14 = tpu.matmul %13, %11, %cst_10 {dimension_numbers = #tpu.dot_dimension_numbers<[1], [0], [0], [1], [0, 0, 1, 1], [], []>} : vector<256x256xf32>, vector<256x128xf32>, vector<256x128xf32> -> vector<256x128xf32>
    %15 = arith.addf %14, %12 : vector<256x128xf32>
    %16 = arith.index_cast %arg0 : i32 to index
    %17 = memref.load %arg1[%16] : memref<2xi32, #tpu.memory_space<smem>>
    %c0_i32_11 = arith.constant 0 : i32
    %18 = arith.cmpi sgt, %17, %c0_i32_11 : i32
    %cst_12 = arith.constant 0.000000e+00 : f32
    %cst_13 = arith.constant 0xFF800000 : f32
    %19 = arith.select %18, %cst_12, %cst_13 : f32
    %20 = vector.broadcast %19 : f32 to vector<256x128xf32>
    %21 = arith.maximumf %15, %20 : vector<256x128xf32>
    %c0_14 = arith.constant 0 : index
    %c0_15 = arith.constant 0 : index
    %22 = vector.load %arg6[%c0_14, %c0_15] : memref<256x128xf32, #tpu.memory_space<vmem>>, vector<256x128xf32>
    tpu.vector_store %arg6[%c0_14, %c0_15], %21 {strides = array<i32>} : memref<256x128xf32, #tpu.memory_space<vmem>>, vector<256x128xf32>,
    return
  }
  func.func @transform_0(%arg0: i32, %arg1: memref<2xi32, #tpu.memory_space<smem>>) -> (i32, i32) {
    %c0_i32 = arith.constant 0 : i32
    %c0_i32_0 = arith.constant 0 : i32
    %c0_i32_1 = arith.constant 0 : i32
    return %c0_i32, %c0_i32_0 : i32, i32
  }
  func.func @transform_1(%arg0: i32, %arg1: memref<2xi32, #tpu.memory_space<smem>>) -> (i32, i32, i32) {
    %c0_i32 = arith.constant 0 : i32
    %c0_i32_0 = arith.constant 0 : i32
    %c0_i32_1 = arith.constant 0 : i32
    return %arg0, %c0_i32, %c0_i32_0 : i32, i32, i32
  }
  func.func @transform_2(%arg0: i32, %arg1: memref<2xi32, #tpu.memory_space<smem>>) -> (i32, i32, i32) {
    %c0_i32 = arith.constant 0 : i32
    %c0_i32_0 = arith.constant 0 : i32
    %c0_i32_1 = arith.constant 0 : i32
    return %arg0, %c0_i32, %c0_i32_0 : i32, i32, i32
  }
  func.func @transform_3(%arg0: i32, %arg1: memref<2xi32, #tpu.memory_space<smem>>) -> (i32, i32) {
    %c0_i32 = arith.constant 0 : i32
    %c0_i32_0 = arith.constant 0 : i32
    %c0_i32_1 = arith.constant 0 : i32
    return %c0_i32, %c0_i32_0 : i32, i32
  }
  func.func @transform_4(%arg0: i32, %arg1: memref<2xi32, #tpu.memory_space<smem>>) -> (i32, i32) {
    %c0_i32 = arith.constant 0 : i32
    %c0_i32_0 = arith.constant 0 : i32
    %c0_i32_1 = arith.constant 0 : i32
    return %c0_i32, %c0_i32_0 : i32, i32
  }
}

</mosaic_0001>

<bundles_post_ra>
// kernel: tpu_custom_call.1
= control target key start
LH: loop header
LB: loop body
LE: loop exit
PB: predicated region body
PF: predicated region fallthrough
CT: control target
= control target key end

     0   :  { %s1305_s21 = smov [#allocation3]   ;;  %s1924_s0 = inlined_call_operand.hbm [shape: s32[2], index: 0, kind: input, shape index: {}]   ;;  %s1925_s1 = inlined_call_operand.vmem [shape: f32[256,256], index: 1, kind: input, shape index: {}]   ;;  %s1926_s2 = inlined_call_operand.hbm [shape: f32[2,128,256], index: 2, kind: input, shape index: {}]   ;;  %s1927_s3 = inlined_call_operand.vmem [shape: f32[2,1,128], index: 3, kind: input, shape index: {}]   ;;  %s1928_s4 = inlined_call_operand.hbm [shape: f32[256,128], index: 4, kind: input, shape index: {}, may-alias: {4,5}]   ;;  %s1929_s5 = inlined_call_operand.hbm [shape: f32[256,128], index: 5, kind: output, shape index: {}, may-alias: {4,5}]  }
   0x1   :  { %s11_s20 = sshll.u32 %s1924_s0, 4  ;;  %s12_s20 = int_to_ptr.hbm [resolvable:$true] %s11_s20 }
   0x2   :  { %14 = dma.hbm_to_smem %s12_s20, 16, %s1305_s21, [#allocation2] }
   0x3   :  { %1275 = dma.done.wait [#allocation2], 16 }
   0x4   :  { %1276 = vsyncadd [#allocation2], 4294967280 }
   0x5   :  { %17 = sfence }
   0x6   :  { %18 = vsyncpa [#allocation5], 0 }
   0x7   :  { %20 = vsyncpa [#allocation5 + $0x1], 0 }
   0x8   :  { %21 = vsyncpa [#allocation8], 0 }
   0x9   :  { %22 = vsyncpa [#allocation6], 0  ;;  %s1347_s22 = smov 0   ;;  %s1349_s23 = smov 0  }
   0xa   :  { %s1351_s24 = smov 0   ;;  %s1353_s25 = smov 0  }
   0xb LB: > { %s1366_s0 = sadd.s32 4294967295, %s1303_s25   ;;  %p69_p0 = scmp.ne.s32.totalorder %s1295_s23, %s1291_s22  ;;  %s1303_s25 = sphi %s1353_s25, %s1936_s25   ;;  %s1299_s24 = sphi %s1351_s24, %s1935_s24   ;;  %s1295_s23 = sphi %s1349_s23, %s1934_s23   ;;  %s1291_s22 = sphi %s1347_s22, %s1933_s22  }
   0xc   : > { %p70_p1 = scmp.eq.s32.totalorder %s1366_s0, 0  ;;  %p1079_p2 = scmp.ge.s32.totalorder %s1303_s25, 1 }
   0xd   : > { %p148_p3 = scmp.lt.s32.totalorder %s1303_s25, 3  ;;  %p1080_p4 = scmp.ne.s32.totalorder %s1366_s0, 0 }
   0xe   : > { %p1375_p5 = por %p70_p1, %p69_p0  ;;  %s162_s29 = sshll.u32 %s1928_s4, 4  ;;  %s163_s29 = int_to_ptr.hbm [resolvable:$true] %s162_s29 }
   0xf   : > { %p1382_p6 = pnand %p1079_p2, %p148_p3  ;;  %s1306_s6 = smov [#allocation7]  }
  0x10   : > { %s164_s7 = sshll.u32 %s1306_s6, 4  ;;  %s1391_s8 = sadd.s32 1, %s1303_s25   ;;  %s165_s7 = int_to_ptr.vmem [resolvable:$true] %s164_s7 }
  0x11   : > { %p1104_p7 = pneg %p1382_p6  ;;  %s1307_s9 = smov 128  }
  0x12   : > { %s1308_s10 = smov 8   ;;  %s53_s11 = ssub.s32 %s1303_s25, %s1391_s8 }
  0x13   : > { %p1105_p8 = pnand %p1104_p7, %p70_p1  ;;  %s56_s12 = sadd.s32 1, %s1299_s24 }
  0x14   : > { %p54_p9 = scmp.eq.s32.totalorder %s53_s11, 0  ;;  %p63_p10 = scmp.ne.s32.totalorder %s1299_s24, %s1295_s23 }
  0x15   : > { %1107 = dma.hbm_to_vmem [thread:$0]  (!%p1105_p8), %s163_s29, 4096, %s165_s7, [#allocation8], %s1307_s9, %s1307_s9, %s1308_s10  }
  0x16   : > { %p64_p11 = scmp.eq.s32.totalorder %s1303_s25, 0  ;;  %p1113_p12 = scmp.lt.s32.totalorder %s1303_s25, 2 }
  0x17   : > { %s1401_s13 = scalar_select %p54_p9, %s1299_s24, %s56_s12  }
  0x18   : > { %p65_p13 = por %p64_p11, %p63_p10  ;;  %s178_s14 = sand.u32 1, %s1299_s24  }
  0x19   : > { %s1082_s15 = sshll.u32 %s178_s14, 8  ;;  %s1093_s16 = sshll.u32 %s1303_s25, 8 }
  0x1a   : > { %s187_s19 = scalar_lea.hbm %s1926_s2, %s1093_s16  ;;  %s182_s20 = scalar_lea.vmem [#allocation4], %s1082_s15 }
  0x1b   : > { %s190_s21 = sshll.u32 %s182_s20, 4  ;;  %s188_s22 = sshll.u32 %s187_s19, 4  ;;  %s191_s21 = int_to_ptr.vmem [resolvable:$true] %s190_s21  ;;  %s189_s22 = int_to_ptr.hbm [resolvable:$true] %s188_s22 }
  0x1c   : > { %p1408_p0 = pnand %p1113_p12, %p65_p13  ;;  %s179_s28 = scalar_lea.sflag [#allocation5], %s178_s14 }
  0x1d   : > { %s1201_s29 = sshra.s32 %s189_s22, 4  ;;  %s1208_s9 = scalar_lea.hbm %s1926_s2, 512  ;;  %s1202_s29 = int_to_ptr.hbm [resolvable:$true] %s1201_s29 }
  0x1e   : > { %s1203_s6 = scalar_lea.hbm %s1202_s29, 256  ;;  %p1205_p3 = pneg %p1408_p0 }
  0x1f   : > { %p1204_p2 = scmp.ne.s32.totalorder %s1202_s29, %s1203_s6  ;;  %p1209_p9 = scmp.lt.s32.totalorder %s1202_s29, %s1926_s2 }
  0x20   : > { %p1210_p10 = scmp.lt.s32.totalorder %s1208_s9, %s1203_s6 }
  0x21   : > { %p1206_p7 = pnand %p1205_p3, %p1204_p2 }
  0x22   : > { %p1211_p11 = por %p1210_p10, %p1209_p9 }
  0x23   : > { %p1207_p8 = pneg %p1206_p7 }
  0x25   : > { %p1212_p12 = pnand %p1211_p11, %p1207_p8 }
  0x27   : > { %1215 = shalt.err (!%p1212_p12)
}
  0x28   : > { %s1309_s12 = smov 256   ;;  %s1310_s14 = smov 16  }
  0x29   : > { %1111 = dma.hbm_to_vmem [thread:$0]  (!%p1408_p0), %s189_s22, 4096, %s191_s21, %s179_s28, %s1309_s12, %s1309_s12, %s1310_s14  }
  0x2a   : > { %208 = sbr.rel (%p1382_p6) target bundleno = 915 (0x393), region = 36  ;;  %s210_s15 = sand.u32 (!%p1382_p6), 1, %s1295_s23  }
  0x2b   : > { %s1086_s16 = sshll.u32 (!%p1382_p6), %s210_s15, 8  ;;  %s211_s17 = scalar_lea.sflag (!%p1382_p6), [#allocation5], %s210_s15 }
  0x2c   : > { %s1425_s18 = scalar_lea.vmem (!%p1382_p6), [#allocation4], %s1086_s16 }
  0x2f   : > { %1278 = dma.done.wait (%p1375_p5), %s211_s17, 4096  }
  0x30   : > { %1280 = vsyncadd (%p1375_p5), %s211_s17, 4294963200 }
  0x31   : > { %1282 = dma.done.wait (%p70_p1), [#allocation8], 4096  }
  0x32   : > { %1284 = vsyncadd (%p70_p1), [#allocation8], 4294963200  ;;  %p243_p6 = scmp.lt.s32.totalorder %s1366_s0, 1  ;;  %249 = sbr.rel (%p1080_p4) target bundleno = 88 (0x58), region = 48 }
  0x34   : > { %s1437_s30 = scalar_select %p243_p6, %s1366_s0, 1 }
  0x36   : > { %s245_s21 = scalar_lea.vmem %s1927_s3, %s1437_s30 }
  0x37   : > { %v250_v0 = vld [vmem:[#allocation7] sm:$0xff]  ;;  %v251_v1 = vld [vmem:[#allocation7 + $0x8] sm:$0xff]  ;;  %v252_v2 = vld [vmem:[#allocation7 + $0x10] sm:$0xff] }
  0x38   : > { %282 = vst [vmem:[#allocation9] sm:$0xff] %v250_v0  ;;  %v253_v3 = vld [vmem:[#allocation7 + $0x18] sm:$0xff]  ;;  %v254_v4 = vld [vmem:[#allocation7 + $0x20] sm:$0xff]  ;;  %v255_v5 = vld [vmem:[#allocation7 + $0x28] sm:$0xff] }
  0x39   : > { %283 = vst [vmem:[#allocation9 + $0x8] sm:$0xff] %v251_v1  ;;  %v256_v6 = vld [vmem:[#allocation7 + $0x30] sm:$0xff]  ;;  %v257_v7 = vld [vmem:[#allocation7 + $0x38] sm:$0xff]  ;;  %v258_v8 = vld [vmem:[#allocation7 + $0x40] sm:$0xff] }
  0x3a   : > { %284 = vst [vmem:[#allocation9 + $0x10] sm:$0xff] %v252_v2  ;;  %v259_v9 = vld [vmem:[#allocation7 + $0x48] sm:$0xff]  ;;  %v260_v10 = vld [vmem:[#allocation7 + $0x50] sm:$0xff]  ;;  %v261_v11 = vld [vmem:[#allocation7 + $0x58] sm:$0xff] }
  0x3b   : > { %285 = vst [vmem:[#allocation9 + $0x18] sm:$0xff] %v253_v3  ;;  %v262_v12 = vld [vmem:[#allocation7 + $0x60] sm:$0xff]  ;;  %v263_v13 = vld [vmem:[#allocation7 + $0x68] sm:$0xff]  ;;  %v264_v14 = vld [vmem:[#allocation7 + $0x70] sm:$0xff] }
  0x3c   : > { %286 = vst [vmem:[#allocation9 + $0x20] sm:$0xff] %v254_v4  ;;  %v265_v15 = vld [vmem:[#allocation7 + $0x78] sm:$0xff]  ;;  %v266_v16 = vld [vmem:[#allocation7 + $0x80] sm:$0xff]  ;;  %v267_v17 = vld [vmem:[#allocation7 + $0x88] sm:$0xff] }
  0x3d   : > { %287 = vst [vmem:[#allocation9 + $0x28] sm:$0xff] %v255_v5  ;;  %v268_v18 = vld [vmem:[#allocation7 + $0x90] sm:$0xff]  ;;  %v269_v19 = vld [vmem:[#allocation7 + $0x98] sm:$0xff]  ;;  %v270_v20 = vld [vmem:[#allocation7 + $0xa0] sm:$0xff] }
  0x3e   : > { %288 = vst [vmem:[#allocation9 + $0x30] sm:$0xff] %v256_v6  ;;  %v271_v21 = vld [vmem:[#allocation7 + $0xa8] sm:$0xff]  ;;  %v272_v22 = vld [vmem:[#allocation7 + $0xb0] sm:$0xff]  ;;  %v273_v23 = vld [vmem:[#allocation7 + $0xb8] sm:$0xff] }
  0x3f   : > { %289 = vst [vmem:[#allocation9 + $0x38] sm:$0xff] %v257_v7  ;;  %v274_v24 = vld [vmem:[#allocation7 + $0xc0] sm:$0xff]  ;;  %v275_v25 = vld [vmem:[#allocation7 + $0xc8] sm:$0xff]  ;;  %v276_v26 = vld [vmem:[#allocation7 + $0xd0] sm:$0xff] }
  0x40   : > { %290 = vst [vmem:[#allocation9 + $0x40] sm:$0xff] %v258_v8  ;;  %v277_v27 = vld [vmem:[#allocation7 + $0xd8] sm:$0xff]  ;;  %v278_v28 = vld [vmem:[#allocation7 + $0xe0] sm:$0xff]  ;;  %v279_v29 = vld [vmem:[#allocation7 + $0xe8] sm:$0xff] }
  0x41   : > { %291 = vst [vmem:[#allocation9 + $0x48] sm:$0xff] %v259_v9  ;;  %v280_v30 = vld [vmem:[#allocation7 + $0xf0] sm:$0xff]  ;;  %v281_v31 = vld [vmem:[#allocation7 + $0xf8] sm:$0xff] }
  0x42   : > { %292 = vst [vmem:[#allocation9 + $0x50] sm:$0xff] %v260_v10 }
  0x43   : > { %293 = vst [vmem:[#allocation9 + $0x58] sm:$0xff] %v261_v11 }
  0x44   : > { %294 = vst [vmem:[#allocation9 + $0x60] sm:$0xff] %v262_v12 }
  0x45   : > { %295 = vst [vmem:[#allocation9 + $0x68] sm:$0xff] %v263_v13 }
  0x46   : > { %296 = vst [vmem:[#allocation9 + $0x70] sm:$0xff] %v264_v14 }
  0x47   : > { %297 = vst [vmem:[#allocation9 + $0x78] sm:$0xff] %v265_v15 }
  0x48   : > { %298 = vst [vmem:[#allocation9 + $0x80] sm:$0xff] %v266_v16 }
  0x49   : > { %299 = vst [vmem:[#allocation9 + $0x88] sm:$0xff] %v267_v17 }
  0x4a   : > { %300 = vst [vmem:[#allocation9 + $0x90] sm:$0xff] %v268_v18 }
  0x4b   : > { %301 = vst [vmem:[#allocation9 + $0x98] sm:$0xff] %v269_v19 }
  0x4c   : > { %302 = vst [vmem:[#allocation9 + $0xa0] sm:$0xff] %v270_v20 }
  0x4d   : > { %303 = vst [vmem:[#allocation9 + $0xa8] sm:$0xff] %v271_v21 }
  0x4e   : > { %304 = vst [vmem:[#allocation9 + $0xb0] sm:$0xff] %v272_v22 }
  0x4f   : > { %305 = vst [vmem:[#allocation9 + $0xb8] sm:$0xff] %v273_v23 }
  0x50   : > { %306 = vst [vmem:[#allocation9 + $0xc0] sm:$0xff] %v274_v24 }
  0x51   : > { %307 = vst [vmem:[#allocation9 + $0xc8] sm:$0xff] %v275_v25 }
  0x52   : > { %308 = vst [vmem:[#allocation9 + $0xd0] sm:$0xff] %v276_v26 }
  0x53   : > { %309 = vst [vmem:[#allocation9 + $0xd8] sm:$0xff] %v277_v27 }
  0x54   : > { %310 = vst [vmem:[#allocation9 + $0xe0] sm:$0xff] %v278_v28 }
  0x55   : > { %311 = vst [vmem:[#allocation9 + $0xe8] sm:$0xff] %v279_v29 }
  0x56   : > { %312 = vst [vmem:[#allocation9 + $0xf0] sm:$0xff] %v280_v30 }
  0x57   : > { %313 = vst [vmem:[#allocation9 + $0xf8] sm:$0xff] %v281_v31 }
  0x58 PF: > { %v376_v32 = vld [vmem:[%s1425_s18 + $0xf0] sm:$0xff]  ;;  %v374_v33 = vld [vmem:[%s1425_s18 + $0xe0] sm:$0xff]  ;;  %v1464_v49 = vld [vmem:[#allocation9 + $0x8] sm:$0xff]  ;;  %s930_s7 = sld [smem:[#allocation3 + %s1366_s0]]  ;;  %s1311_s25 = smov [#allocation9]  }
  0x59   : > { %378 = vmatpush.msra.mxu0 %v376_v32  ;;  %v372_v34 = vld [vmem:[%s1425_s18 + $0xd0] sm:$0xff]  ;;  %v370_v35 = vld [vmem:[%s1425_s18 + $0xc0] sm:$0xff]  ;;  %v1470_v51 = vld [vmem:[#allocation9 + $0x18] sm:$0xff]  ;;  %s1005_s11 = sshll.u32 %s1929_s5, 4  ;;  %p1115_p4 = scmp.eq.s32.totalorder %s1366_s0, 1  ;;  %s1006_s11 = int_to_ptr.hbm [resolvable:$true] %s1005_s11 }
  0x5a   : > { %v368_v36 = vld [vmem:[%s1425_s18 + $0xb0] sm:$0xff]  ;;  %v366_v37 = vld [vmem:[%s1425_s18 + $0xa0] sm:$0xff]  ;;  %v1476_v53 = vld [vmem:[#allocation9 + $0x28] sm:$0xff]  ;;  %s1312_s12 = smov 128   ;;  %s1313_s14 = smov 8  }
  0x5b   : > { %379 = vmatpush.msra.mxu0 %v374_v33  ;;  %v364_v38 = vld [vmem:[%s1425_s18 + $0x90] sm:$0xff]  ;;  %v362_v39 = vld [vmem:[%s1425_s18 + $0x80] sm:$0xff]  ;;  %v1482_v55 = vld [vmem:[#allocation9 + $0x38] sm:$0xff] }
  0x5c   : > { %v360_v40 = vld [vmem:[%s1425_s18 + $0x70] sm:$0xff]  ;;  %v358_v41 = vld [vmem:[%s1425_s18 + $0x60] sm:$0xff]  ;;  %v1488_v57 = vld [vmem:[#allocation9 + $0x48] sm:$0xff] }
  0x5d   : > { %380 = vmatpush.msra.mxu0 %v372_v34  ;;  %v356_v42 = vld [vmem:[%s1425_s18 + $0x50] sm:$0xff]  ;;  %v354_v43 = vld [vmem:[%s1425_s18 + $0x40] sm:$0xff]  ;;  %v1494_v59 = vld [vmem:[#allocation9 + $0x58] sm:$0xff] }
  0x5e   : > { %v352_v44 = vld [vmem:[%s1425_s18 + $0x30] sm:$0xff]  ;;  %v350_v45 = vld [vmem:[%s1425_s18 + $0x20] sm:$0xff]  ;;  %v1500_v61 = vld [vmem:[#allocation9 + $0x68] sm:$0xff]  ;;  %p931_p1 = scmp.gt.s32.totalorder %s930_s7, 0  ;;  %s1003_s7 = sshll.u32 %s1311_s25, 4  ;;  %s1004_s7 = int_to_ptr.vmem [resolvable:$true] %s1003_s7 }
  0x5f   : > { %381 = vmatpush.msra.mxu0 %v370_v35  ;;  %v348_v46 = vld [vmem:[%s1425_s18 + $0x10] sm:$0xff]  ;;  %v346_v47 = vld [vmem:[%s1425_s18] sm:$0xff]  ;;  %v1506_v63 = vld [vmem:[#allocation9 + $0x78] sm:$0xff] }
  0x60   : > { %v1461_v48 = vld [vmem:[#allocation9] sm:$0xff]  ;;  %v1467_v50 = vld [vmem:[#allocation9 + $0x10] sm:$0xff]  ;;  %v1516_v3 = vld [vmem:[#allocation9 + $0x88] sm:$0xff] }
  0x61   : > { %382 = vmatpush.msra.mxu0 %v368_v36  ;;  %v1473_v52 = vld [vmem:[#allocation9 + $0x20] sm:$0xff]  ;;  %v1479_v54 = vld [vmem:[#allocation9 + $0x30] sm:$0xff]  ;;  %v1526_v7 = vld [vmem:[#allocation9 + $0x98] sm:$0xff] }
  0x62   : > { %v1485_v56 = vld [vmem:[#allocation9 + $0x40] sm:$0xff]  ;;  %v1491_v58 = vld [vmem:[#allocation9 + $0x50] sm:$0xff]  ;;  %v1532_v11 = vld [vmem:[#allocation9 + $0xa8] sm:$0xff] }
  0x63   : > { %383 = vmatpush.msra.mxu0 %v366_v37  ;;  %v1497_v60 = vld [vmem:[#allocation9 + $0x60] sm:$0xff]  ;;  %v1503_v62 = vld [vmem:[#allocation9 + $0x70] sm:$0xff]  ;;  %v1538_v15 = vld [vmem:[#allocation9 + $0xb8] sm:$0xff] }
  0x64   : > { %v1511_v1 = vld [vmem:[#allocation9 + $0x80] sm:$0xff]  ;;  %v1521_v5 = vld [vmem:[#allocation9 + $0x90] sm:$0xff]  ;;  %v1544_v19 = vld [vmem:[#allocation9 + $0xc8] sm:$0xff] }
  0x65   : > { %384 = vmatpush.msra.mxu0 %v364_v38  ;;  %v1529_v9 = vld [vmem:[#allocation9 + $0xa0] sm:$0xff]  ;;  %v1535_v13 = vld [vmem:[#allocation9 + $0xb0] sm:$0xff]  ;;  %v1550_v23 = vld [vmem:[#allocation9 + $0xd8] sm:$0xff] }
  0x66   : > { %v1541_v17 = vld [vmem:[#allocation9 + $0xc0] sm:$0xff]  ;;  %v1547_v21 = vld [vmem:[#allocation9 + $0xd0] sm:$0xff]  ;;  %v1556_v27 = vld [vmem:[#allocation9 + $0xe8] sm:$0xff] }
  0x67   : > { %385 = vmatpush.msra.mxu0 %v362_v39  ;;  %v1553_v25 = vld [vmem:[#allocation9 + $0xe0] sm:$0xff]  ;;  %v1559_v29 = vld [vmem:[#allocation9 + $0xf0] sm:$0xff]  ;;  %v1569_v32 = vld [vmem:[#allocation9 + $0xf8] sm:$0xff] }
  0x68   : > { %v1567_v30 = vld [vmem:[%s245_s21] ss:$0 sm:$0xff] }
  0x69   : > { %386 = vmatpush.msra.mxu0 %v360_v40 }
  0x6b   : > { %387 = vmatpush.msra.mxu0 %v358_v41 }
  0x6d   : > { %388 = vmatpush.msra.mxu0 %v356_v42 }
  0x6f   : > { %389 = vmatpush.msra.mxu0 %v354_v43 }
  0x71   : > { %390 = vmatpush.msra.mxu0 %v352_v44 }
  0x73   : > { %391 = vmatpush.msra.mxu0 %v350_v45 }
  0x75   : > { %392 = vmatpush.msra.mxu0 %v348_v46 }
  0x77   : > { %393 = vmatpush.msra.mxu0 %v346_v47 }
  0x78   : > { %394 = vmatmul.f32.vlgmr.msra.gmra.mxu0 %v1461_v48 }
  0x80   : > { %397 = vmatmul.f32.gmra.mxu0 %v1464_v49 }
  0x88   : > { %400 = vmatmul.f32.gmra.mxu0 %v1467_v50 }
  0x90   : > { %403 = vmatmul.f32.gmra.mxu0 %v1470_v51 }
  0x98   : > { %406 = vmatmul.f32.gmra.mxu0 %v1473_v52 }
  0xa0   : > { %409 = vmatmul.f32.gmra.mxu0 %v1476_v53 }
  0xa8   : > { %412 = vmatmul.f32.gmra.mxu0 %v1479_v54 }
  0xb0   : > { %415 = vmatmul.f32.gmra.mxu0 %v1482_v55 }
  0xb8   : > { %418 = vmatmul.f32.gmra.mxu0 %v1485_v56 }
  0xc0   : > { %421 = vmatmul.f32.gmra.mxu0 %v1488_v57 }
  0xc8   : > { %424 = vmatmul.f32.gmra.mxu0 %v1491_v58 }
  0xd0   : > { %427 = vmatmul.f32.gmra.mxu0 %v1494_v59 }
  0xd8   : > { %430 = vmatmul.f32.gmra.mxu0 %v1497_v60 }
  0xe0   : > { %433 = vmatmul.f32.gmra.mxu0 %v1500_v61 }
  0xe8   : > { %436 = vmatmul.f32.gmra.mxu0 %v1503_v62 }
  0xf0   : > { %439 = vmatmul.f32.gmra.mxu0 %v1506_v63 }
  0xf5   : > { %v1509_v0 = vpop.f32.mrf.mxu0 }
  0xf8   : > { %442 = vmatmul.f32.gmra.mxu0 %v1511_v1 }
  0xfd   : > { %v1514_v2 = vpop.f32.mrf.mxu0 }
 0x100   : > { %445 = vmatmul.f32.gmra.mxu0 %v1516_v3 }
 0x105   : > { %v1519_v4 = vpop.f32.mrf.mxu0 }
 0x108   : > { %448 = vmatmul.f32.gmra.mxu0 %v1521_v5 }
 0x10d   : > { %v1524_v6 = vpop.f32.mrf.mxu0 }
 0x110   : > { %451 = vmatmul.f32.gmra.mxu0 %v1526_v7 }
 0x115   : > { %v407_v8 = vpop.f32.mrf.mxu0 }
 0x116   : > { %v612_v46 = vadd.f32 %v1567_v30, %v407_v8  ;;  %v608_v8 = vadd.f32 %v1567_v30, %v1509_v0 }
 0x118   : > { %454 = vmatmul.f32.gmra.mxu0 %v1529_v9 }
 0x11d   : > { %v410_v10 = vpop.f32.mrf.mxu0 }
 0x11e   : > { %v613_v45 = vadd.f32 %v1567_v30, %v410_v10 }
 0x120   : > { %457 = vmatmul.f32.gmra.mxu0 %v1532_v11 }
 0x125   : > { %v413_v12 = vpop.f32.mrf.mxu0 }
 0x126   : > { %v614_v44 = vadd.f32 %v1567_v30, %v413_v12  ;;  %v609_v12 = vadd.f32 %v1567_v30, %v1514_v2 }
 0x128   : > { %460 = vmatmul.f32.gmra.mxu0 %v1535_v13 }
 0x12d   : > { %v416_v14 = vpop.f32.mrf.mxu0 }
 0x12e   : > { %v615_v43 = vadd.f32 %v1567_v30, %v416_v14  ;;  %v610_v14 = vadd.f32 %v1567_v30, %v1519_v4 }
 0x130   : > { %463 = vmatmul.f32.gmra.mxu0 %v1538_v15 }
 0x135   : > { %v419_v16 = vpop.f32.mrf.mxu0 }
 0x136   : > { %v616_v41 = vadd.f32 %v1567_v30, %v419_v16  ;;  %v611_v16 = vadd.f32 %v1567_v30, %v1524_v6 }
 0x138   : > { %466 = vmatmul.f32.gmra.mxu0 %v1541_v17 }
 0x13d   : > { %v422_v18 = vpop.f32.mrf.mxu0 }
 0x13e   : > { %v617_v40 = vadd.f32 %v1567_v30, %v422_v18 }
 0x140   : > { %469 = vmatmul.f32.gmra.mxu0 %v1544_v19 }
 0x145   : > { %v425_v20 = vpop.f32.mrf.mxu0 }
 0x146   : > { %v618_v39 = vadd.f32 %v1567_v30, %v425_v20 }
 0x148   : > { %472 = vmatmul.f32.gmra.mxu0 %v1547_v21 }
 0x14d   : > { %v428_v22 = vpop.f32.mrf.mxu0 }
 0x14e   : > { %v619_v38 = vadd.f32 %v1567_v30, %v428_v22 }
 0x150   : > { %475 = vmatmul.f32.gmra.mxu0 %v1550_v23 }
 0x155   : > { %v431_v24 = vpop.f32.mrf.mxu0 }
 0x156   : > { %v620_v36 = vadd.f32 %v1567_v30, %v431_v24 }
 0x158   : > { %478 = vmatmul.f32.gmra.mxu0 %v1553_v25 }
 0x15d   : > { %v434_v26 = vpop.f32.mrf.mxu0 }
 0x15e   : > { %v621_v35 = vadd.f32 %v1567_v30, %v434_v26  ;;  %v377_v26 = vld [vmem:[%s1425_s18 + $0xf8] sm:$0xff] }
 0x15f   : > { %491 = vmatpush.msra.mxu1 %v377_v26 }
 0x160   : > { %481 = vmatmul.f32.gmra.mxu0 %v1556_v27 }
 0x165   : > { %v437_v28 = vpop.f32.mrf.mxu0 }
 0x166   : > { %v622_v34 = vadd.f32 %v1567_v30, %v437_v28  ;;  %v375_v28 = vld [vmem:[%s1425_s18 + $0xe8] sm:$0xff] }
 0x167   : > { %492 = vmatpush.msra.mxu1 %v375_v28  ;;  %v349_v28 = vld [vmem:[%s1425_s18 + $0x18] sm:$0xff] }
 0x168   : > { %484 = vmatmul.f32.gmra.mxu0 %v1559_v29 }
 0x16d   : > { %v440_v31 = vpop.f32.mrf.mxu0 }
 0x16e   : > { %v623_v33 = vadd.f32 %v1567_v30, %v440_v31 }
 0x170   : > { %487 = vmatmul.f32.gmra.mxu0 %v1569_v32  ;;  %704 = vmatpush.msra.mxu2 %v623_v33  ;;  %v373_v33 = vld [vmem:[%s1425_s18 + $0xd8] sm:$0xff] }
 0x171   : > { %493 = vmatpush.msra.mxu1 %v373_v33  ;;  %v347_v33 = vld [vmem:[%s1425_s18 + $0x8] sm:$0xff] }
 0x172   : > { %705 = vmatpush.msra.mxu2 %v622_v34  ;;  %v371_v34 = vld [vmem:[%s1425_s18 + $0xc8] sm:$0xff] }
 0x173   : > { %494 = vmatpush.msra.mxu1 %v371_v34 }
 0x174   : > { %706 = vmatpush.msra.mxu2 %v621_v35  ;;  %v369_v35 = vld [vmem:[%s1425_s18 + $0xb8] sm:$0xff] }
 0x175   : > { %v1576_v37 = vpop.f32.mrf.mxu0  ;;  %495 = vmatpush.msra.mxu1 %v369_v35 }
 0x176   : > { %707 = vmatpush.msra.mxu2 %v620_v36  ;;  %v367_v36 = vld [vmem:[%s1425_s18 + $0xa8] sm:$0xff] }
 0x177   : > { %496 = vmatpush.msra.mxu1 %v367_v36  ;;  %v642_v36 = vld [vmem:[%s1925_s1 + $0x10] sm:$0xff] }
 0x178   : > { %708 = vmatpush.msra.mxu2 %v619_v38 }
 0x17a   : > { %709 = vmatpush.msra.mxu2 %v618_v39  ;;  %v365_v39 = vld [vmem:[%s1425_s18 + $0x98] sm:$0xff] }
 0x17b   : > { %497 = vmatpush.msra.mxu1 %v365_v39 }
 0x17c   : > { %710 = vmatpush.msra.mxu2 %v617_v40  ;;  %v363_v40 = vld [vmem:[%s1425_s18 + $0x88] sm:$0xff] }
 0x17d   : > { %v1582_v42 = vpop.f32.mrf.mxu0  ;;  %498 = vmatpush.msra.mxu1 %v363_v40 }
 0x17e   : > { %711 = vmatpush.msra.mxu2 %v616_v41  ;;  %v361_v41 = vld [vmem:[%s1425_s18 + $0x78] sm:$0xff] }
 0x17f   : > { %499 = vmatpush.msra.mxu1 %v361_v41 }
 0x180   : > { %712 = vmatpush.msra.mxu2 %v615_v43  ;;  %v359_v43 = vld [vmem:[%s1425_s18 + $0x68] sm:$0xff] }
 0x181   : > { %500 = vmatpush.msra.mxu1 %v359_v43  ;;  %v644_v43 = vld [vmem:[%s1925_s1 + $0x20] sm:$0xff] }
 0x182   : > { %713 = vmatpush.msra.mxu2 %v614_v44 }
 0x184   : > { %714 = vmatpush.msra.mxu2 %v613_v45  ;;  %v357_v45 = vld [vmem:[%s1425_s18 + $0x58] sm:$0xff] }
 0x185   : > { %v1588_v47 = vpop.f32.mrf.mxu0  ;;  %501 = vmatpush.msra.mxu1 %v357_v45  ;;  %v653_v45 = vld [vmem:[%s1925_s1 + $0x68] sm:$0xff] }
 0x186   : > { %715 = vmatpush.msra.mxu2 %v612_v46  ;;  %v355_v46 = vld [vmem:[%s1425_s18 + $0x48] sm:$0xff] }
 0x187   : > { %502 = vmatpush.msra.mxu1 %v355_v46  ;;  %v655_v46 = vld [vmem:[%s1925_s1 + $0x78] sm:$0xff] }
 0x188   : > { %716 = vmatpush.msra.mxu2 %v611_v16  ;;  %v353_v16 = vld [vmem:[%s1425_s18 + $0x38] sm:$0xff] }
 0x189   : > { %503 = vmatpush.msra.mxu1 %v353_v16  ;;  %v657_v16 = vld [vmem:[%s1925_s1 + $0x88] sm:$0xff] }
 0x18a   : > { %717 = vmatpush.msra.mxu2 %v610_v14  ;;  %v640_v14 = vld [vmem:[%s1925_s1] sm:$0xff] }
 0x18c   : > { %718 = vmatpush.msra.mxu2 %v609_v12  ;;  %v351_v12 = vld [vmem:[%s1425_s18 + $0x28] sm:$0xff]  ;;  %s932_s18 = scalar_select %p931_p1, 0.0, -inf }
 0x18d   : > { %v1598_v10 = vpop.f32.mrf.mxu0  ;;  %504 = vmatpush.msra.mxu1 %v351_v12  ;;  %v661_v12 = vld [vmem:[%s1925_s1 + $0xa8] sm:$0xff] }
 0x18e   : > { %719 = vmatpush.msra.mxu2 %v608_v8 }
 0x18f   : > { %720 = vmatmul.f32.vlgmr.msra.gmra.mxu2 %v640_v14  ;;  %505 = vmatpush.msra.mxu1 %v349_v28  ;;  %v659_v14 = vld [vmem:[%s1925_s1 + $0x98] sm:$0xff] }
 0x191   : > { %506 = vmatpush.msra.mxu1 %v347_v33  ;;  %v667_v33 = vld [vmem:[%s1925_s1 + $0xd8] sm:$0xff] }
 0x192   : > { %507 = vmatmul.f32.vlgmr.msra.gmra.mxu1 %v1461_v48 }
 0x195   : > { %v1600_v6 = vpop.f32.mrf.mxu0 }
 0x197   : > { %723 = vmatmul.f32.gmra.mxu2 %v642_v36  ;;  %v669_v36 = vld [vmem:[%s1925_s1 + $0xe8] sm:$0xff] }
 0x19a   : > { %510 = vmatmul.f32.gmra.mxu1 %v1464_v49  ;;  %v646_v49 = vld [vmem:[%s1925_s1 + $0x30] sm:$0xff] }
 0x19d   : > { %v1602_v18 = vpop.f32.mrf.mxu0 }
 0x19f   : > { %726 = vmatmul.f32.gmra.mxu2 %v644_v43 }
 0x1a2   : > { %513 = vmatmul.f32.gmra.mxu1 %v1467_v50  ;;  %v648_v50 = vld [vmem:[%s1925_s1 + $0x40] sm:$0xff] }
 0x1a5   : > { %v1604_v4 = vpop.f32.mrf.mxu0 }
 0x1a7   : > { %729 = vmatmul.f32.gmra.mxu2 %v646_v49 }
 0x1aa   : > { %516 = vmatmul.f32.gmra.mxu1 %v1470_v51  ;;  %v643_v51 = vld [vmem:[%s1925_s1 + $0x18] sm:$0xff] }
 0x1ad   : > { %v1606_v20 = vpop.f32.mrf.mxu0 }
 0x1af   : > { %732 = vmatmul.f32.gmra.mxu2 %v648_v50 }
 0x1b2   : > { %519 = vmatmul.f32.gmra.mxu1 %v1473_v52  ;;  %v654_v52 = vld [vmem:[%s1925_s1 + $0x70] sm:$0xff] }
 0x1b5   : > { %v467_v2 = vpop.f32.mrf.mxu0 }
 0x1b6   : > { %v632_v48 = vadd.f32 %v1567_v30, %v467_v2  ;;  %v628_v2 = vadd.f32 %v1567_v30, %v1600_v6  ;;  %v624_v6 = vadd.f32 %v1567_v30, %v1576_v37  ;;  %v645_v37 = vld [vmem:[%s1925_s1 + $0x28] sm:$0xff] }
 0x1ba   : > { %522 = vmatmul.f32.gmra.mxu1 %v1476_v53  ;;  %v656_v53 = vld [vmem:[%s1925_s1 + $0x80] sm:$0xff] }
 0x1bd   : > { %v470_v22 = vpop.f32.mrf.mxu0 }
 0x1c2   : > { %525 = vmatmul.f32.gmra.mxu1 %v1479_v54  ;;  %v658_v54 = vld [vmem:[%s1925_s1 + $0x90] sm:$0xff] }
 0x1c5   : > { %v473_v24 = vpop.f32.mrf.mxu0 }
 0x1c6   : > { %v634_v41 = vadd.f32 %v1567_v30, %v473_v24  ;;  %v630_v24 = vadd.f32 %v1567_v30, %v1604_v4  ;;  %v626_v4 = vadd.f32 %v1567_v30, %v1588_v47  ;;  %v647_v47 = vld [vmem:[%s1925_s1 + $0x38] sm:$0xff] }
 0x1ca   : > { %528 = vmatmul.f32.gmra.mxu1 %v1482_v55  ;;  %v660_v55 = vld [vmem:[%s1925_s1 + $0xa0] sm:$0xff] }
 0x1cd   : > { %v476_v0 = vpop.f32.mrf.mxu0 }
 0x1ce   : > { %v635_v40 = vadd.f32 %v1567_v30, %v476_v0  ;;  %v631_v0 = vadd.f32 %v1567_v30, %v1606_v20  ;;  %v627_v20 = vadd.f32 %v1567_v30, %v1598_v10  ;;  %v641_v10 = vld [vmem:[%s1925_s1 + $0x8] sm:$0xff] }
 0x1d2   : > { %531 = vmatmul.f32.gmra.mxu1 %v1485_v56  ;;  %v662_v56 = vld [vmem:[%s1925_s1 + $0xb0] sm:$0xff] }
 0x1d5   : > { %v479_v31 = vpop.f32.mrf.mxu0 }
 0x1d6   : > { %v636_v39 = vadd.f32 %v1567_v30, %v479_v31  ;;  %v649_v31 = vld [vmem:[%s1925_s1 + $0x48] sm:$0xff] }
 0x1da   : > { %534 = vmatmul.f32.gmra.mxu1 %v1488_v57  ;;  %v664_v57 = vld [vmem:[%s1925_s1 + $0xc0] sm:$0xff] }
 0x1dd   : > { %v482_v38 = vpop.f32.mrf.mxu0 }
 0x1de   : > { %v637_v35 = vadd.f32 %v1567_v30, %v482_v38  ;;  %v633_v38 = vadd.f32 %v1567_v30, %v470_v22  ;;  %v629_v22 = vadd.f32 %v1567_v30, %v1602_v18  ;;  %v625_v18 = vadd.f32 %v1567_v30, %v1582_v42  ;;  %v650_v42 = vld [vmem:[%s1925_s1 + $0x50] sm:$0xff] }
 0x1df   : > { %735 = vmatmul.f32.gmra.mxu2 %v650_v42 }
 0x1e2   : > { %537 = vmatmul.f32.gmra.mxu1 %v1491_v58  ;;  %v666_v58 = vld [vmem:[%s1925_s1 + $0xd0] sm:$0xff] }
 0x1e5   : > { %v485_v44 = vpop.f32.mrf.mxu0 }
 0x1e6   : > { %v638_v34 = vadd.f32 %v1567_v30, %v485_v44  ;;  %v651_v44 = vld [vmem:[%s1925_s1 + $0x58] sm:$0xff] }
 0x1ea   : > { %540 = vmatmul.f32.gmra.mxu1 %v1494_v59  ;;  %v668_v59 = vld [vmem:[%s1925_s1 + $0xe0] sm:$0xff] }
 0x1ed   : > { %v488_v8 = vpop.f32.mrf.mxu0 }
 0x1ee   : > { %v639_v26 = vadd.f32 %v1567_v30, %v488_v8  ;;  %v652_v30 = vld [vmem:[%s1925_s1 + $0x60] sm:$0xff]  ;;  %v663_v8 = vld [vmem:[%s1925_s1 + $0xb8] sm:$0xff] }
 0x1ef   : > { %738 = vmatmul.f32.gmra.mxu2 %v652_v30  ;;  %v684_v30 = vld [vmem:[%s1925_s1 + $0x160] sm:$0xff] }
 0x1f0   : > { %817 = vmatpush.msra.mxu3 %v639_v26  ;;  %v665_v26 = vld [vmem:[%s1925_s1 + $0xc8] sm:$0xff] }
 0x1f2   : > { %818 = vmatpush.msra.mxu3 %v638_v34  ;;  %543 = vmatmul.f32.gmra.mxu1 %v1497_v60  ;;  %v670_v60 = vld [vmem:[%s1925_s1 + $0xf0] sm:$0xff] }
 0x1f3   : > { %v674_v34 = vld [vmem:[%s1925_s1 + $0x110] sm:$0xff] }
 0x1f4   : > { %819 = vmatpush.msra.mxu3 %v637_v35 }
 0x1f6   : > { %820 = vmatpush.msra.mxu3 %v636_v39 }
 0x1f7   : > { %741 = vmatmul.f32.gmra.mxu2 %v654_v52 }
 0x1f8   : > { %821 = vmatpush.msra.mxu3 %v635_v40 }
 0x1fa   : > { %822 = vmatpush.msra.mxu3 %v634_v41  ;;  %546 = vmatmul.f32.gmra.mxu1 %v1500_v61  ;;  %v672_v61 = vld [vmem:[%s1925_s1 + $0x100] sm:$0xff]  ;;  %v671_v41 = vld [vmem:[%s1925_s1 + $0xf8] sm:$0xff] }
 0x1fc   : > { %823 = vmatpush.msra.mxu3 %v633_v38 }
 0x1fe   : > { %824 = vmatpush.msra.mxu3 %v632_v48  ;;  %v673_v48 = vld [vmem:[%s1925_s1 + $0x108] sm:$0xff] }
 0x1ff   : > { %744 = vmatmul.f32.gmra.mxu2 %v656_v53 }
 0x200   : > { %825 = vmatpush.msra.mxu3 %v631_v0 }
 0x202   : > { %826 = vmatpush.msra.mxu3 %v630_v24  ;;  %549 = vmatmul.f32.gmra.mxu1 %v1503_v62 }
 0x204   : > { %827 = vmatpush.msra.mxu3 %v629_v22 }
 0x206   : > { %828 = vmatpush.msra.mxu3 %v628_v2  ;;  %v1783_v2 = vstv %s932_s18 }
 0x207   : > { %747 = vmatmul.f32.gmra.mxu2 %v658_v54 }
 0x208   : > { %829 = vmatpush.msra.mxu3 %v627_v20 }
 0x20a   : > { %830 = vmatpush.msra.mxu3 %v626_v4  ;;  %552 = vmatmul.f32.gmra.mxu1 %v1506_v63  ;;  %v682_v4 = vld [vmem:[%s1925_s1 + $0x150] sm:$0xff] }
 0x20c   : > { %831 = vmatpush.msra.mxu3 %v625_v18 }
 0x20e   : > { %832 = vmatpush.msra.mxu3 %v624_v6 }
 0x20f   : > { %833 = vmatmul.f32.vlgmr.msra.gmra.mxu3 %v641_v10  ;;  %750 = vmatmul.f32.gmra.mxu2 %v660_v55  ;;  %v508_v28 = vpop.f32.mrf.mxu1 }
 0x212   : > { %v721_v62 = vpop.f32.mrf.mxu2  ;;  %555 = vmatmul.f32.gmra.mxu1 %v1511_v1  ;;  %v676_v1 = vld [vmem:[%s1925_s1 + $0x120] sm:$0xff] }
 0x213   : > { %v722_v0 = vadd.f32 %v721_v62, %v508_v28 }
 0x217   : > { %836 = vmatmul.f32.gmra.mxu3 %v643_v51  ;;  %753 = vmatmul.f32.gmra.mxu2 %v662_v56  ;;  %v511_v63 = vpop.f32.mrf.mxu1 }
 0x21a   : > { %v724_v35 = vpop.f32.mrf.mxu2  ;;  %558 = vmatmul.f32.gmra.mxu1 %v1516_v3  ;;  %v678_v3 = vld [vmem:[%s1925_s1 + $0x130] sm:$0xff] }
 0x21b   : > { %v725_v50 = vadd.f32 %v724_v35, %v511_v63 }
 0x21f   : > { %839 = vmatmul.f32.gmra.mxu3 %v645_v37  ;;  %756 = vmatmul.f32.gmra.mxu2 %v664_v57  ;;  %v514_v39 = vpop.f32.mrf.mxu1 }
 0x222   : > { %v727_v40 = vpop.f32.mrf.mxu2  ;;  %561 = vmatmul.f32.gmra.mxu1 %v1521_v5  ;;  %v680_v5 = vld [vmem:[%s1925_s1 + $0x140] sm:$0xff] }
 0x223   : > { %v728_v52 = vadd.f32 %v727_v40, %v514_v39 }
 0x227   : > { %842 = vmatmul.f32.gmra.mxu3 %v647_v47  ;;  %759 = vmatmul.f32.gmra.mxu2 %v666_v58  ;;  %v517_v38 = vpop.f32.mrf.mxu1  ;;  %v688_v58 = vld [vmem:[%s1925_s1 + $0x180] sm:$0xff] }
 0x22a   : > { %v730_v43 = vpop.f32.mrf.mxu2  ;;  %564 = vmatmul.f32.gmra.mxu1 %v1526_v7  ;;  %v675_v7 = vld [vmem:[%s1925_s1 + $0x118] sm:$0xff] }
 0x22f   : > { %845 = vmatmul.f32.gmra.mxu3 %v649_v31  ;;  %762 = vmatmul.f32.gmra.mxu2 %v668_v59  ;;  %v520_v24 = vpop.f32.mrf.mxu1 }
 0x232   : > { %v733_v22 = vpop.f32.mrf.mxu2  ;;  %567 = vmatmul.f32.gmra.mxu1 %v1529_v9  ;;  %v677_v9 = vld [vmem:[%s1925_s1 + $0x128] sm:$0xff] }
 0x233   : > { %v734_v59 = vadd.f32 %v733_v22, %v520_v24 }
 0x237   : > { %848 = vmatmul.f32.gmra.mxu3 %v651_v44  ;;  %765 = vmatmul.f32.gmra.mxu2 %v670_v60  ;;  %v523_v6 = vpop.f32.mrf.mxu1  ;;  %v686_v44 = vld [vmem:[%s1925_s1 + $0x170] sm:$0xff] }
 0x23a   : > { %570 = vmatmul.f32.gmra.mxu1 %v1532_v11  ;;  %v679_v11 = vld [vmem:[%s1925_s1 + $0x138] sm:$0xff] }
 0x23f   : > { %851 = vmatmul.f32.gmra.mxu3 %v653_v45  ;;  %768 = vmatmul.f32.gmra.mxu2 %v672_v61  ;;  %v526_v47 = vpop.f32.mrf.mxu1  ;;  %v731_v45 = vadd.f32 %v730_v43, %v517_v38  ;;  %v694_v43 = vld [vmem:[%s1925_s1 + $0x1b0] sm:$0xff] }
 0x242   : > { %573 = vmatmul.f32.gmra.mxu1 %v1535_v13  ;;  %v681_v13 = vld [vmem:[%s1925_s1 + $0x148] sm:$0xff] }
 0x247   : > { %854 = vmatmul.f32.gmra.mxu3 %v655_v46  ;;  %771 = vmatmul.f32.gmra.mxu2 %v674_v34  ;;  %v529_v56 = vpop.f32.mrf.mxu1 }
 0x24a   : > { %576 = vmatmul.f32.gmra.mxu1 %v1538_v15  ;;  %v683_v15 = vld [vmem:[%s1925_s1 + $0x158] sm:$0xff] }
 0x24f   : > { %857 = vmatmul.f32.gmra.mxu3 %v657_v16  ;;  %774 = vmatmul.f32.gmra.mxu2 %v676_v1 }
 0x252   : > { %579 = vmatmul.f32.gmra.mxu1 %v1541_v17  ;;  %v685_v17 = vld [vmem:[%s1925_s1 + $0x168] sm:$0xff] }
 0x257   : > { %860 = vmatmul.f32.gmra.mxu3 %v659_v14  ;;  %777 = vmatmul.f32.gmra.mxu2 %v678_v3 }
 0x25a   : > { %582 = vmatmul.f32.gmra.mxu1 %v1544_v19  ;;  %v687_v19 = vld [vmem:[%s1925_s1 + $0x178] sm:$0xff] }
 0x25f   : > { %863 = vmatmul.f32.gmra.mxu3 %v661_v12  ;;  %780 = vmatmul.f32.gmra.mxu2 %v680_v5  ;;  %v532_v12 = vpop.f32.mrf.mxu1 }
 0x262   : > { %v736_v10 = vpop.f32.mrf.mxu2  ;;  %585 = vmatmul.f32.gmra.mxu1 %v1547_v21  ;;  %v689_v21 = vld [vmem:[%s1925_s1 + $0x188] sm:$0xff] }
 0x263   : > { %v737_v62 = vadd.f32 %v736_v10, %v523_v6 }
 0x267   : > { %866 = vmatmul.f32.gmra.mxu3 %v663_v8  ;;  %783 = vmatmul.f32.gmra.mxu2 %v682_v4 }
 0x26a   : > { %588 = vmatmul.f32.gmra.mxu1 %v1550_v23  ;;  %v691_v23 = vld [vmem:[%s1925_s1 + $0x198] sm:$0xff] }
 0x26f   : > { %869 = vmatmul.f32.gmra.mxu3 %v665_v26  ;;  %786 = vmatmul.f32.gmra.mxu2 %v684_v30  ;;  %v690_v26 = vld [vmem:[%s1925_s1 + $0x190] sm:$0xff] }
 0x272   : > { %v739_v53 = vpop.f32.mrf.mxu2  ;;  %591 = vmatmul.f32.gmra.mxu1 %v1553_v25  ;;  %v693_v25 = vld [vmem:[%s1925_s1 + $0x1a8] sm:$0xff] }
 0x273   : > { %v740_v39 = vadd.f32 %v739_v53, %v526_v47  ;;  %v700_v53 = vld [vmem:[%s1925_s1 + $0x1e0] sm:$0xff] }
 0x277   : > { %872 = vmatmul.f32.gmra.mxu3 %v667_v33  ;;  %789 = vmatmul.f32.gmra.mxu2 %v686_v44  ;;  %v535_v33 = vpop.f32.mrf.mxu1 }
 0x27a   : > { %v742_v46 = vpop.f32.mrf.mxu2  ;;  %594 = vmatmul.f32.gmra.mxu1 %v1556_v27  ;;  %v695_v27 = vld [vmem:[%s1925_s1 + $0x1b8] sm:$0xff] }
 0x27b   : > { %v743_v5 = vadd.f32 %v742_v46, %v529_v56  ;;  %v702_v56 = vld [vmem:[%s1925_s1 + $0x1f0] sm:$0xff] }
 0x27f   : > { %875 = vmatmul.f32.gmra.mxu3 %v669_v36  ;;  %792 = vmatmul.f32.gmra.mxu2 %v688_v58  ;;  %v692_v36 = vld [vmem:[%s1925_s1 + $0x1a0] sm:$0xff]  ;;  %v538_v40 = vpop.f32.mrf.mxu1 }
 0x282   : > { %v745_v60 = vpop.f32.mrf.mxu2  ;;  %597 = vmatmul.f32.gmra.mxu1 %v1559_v29  ;;  %v697_v29 = vld [vmem:[%s1925_s1 + $0x1c8] sm:$0xff] }
 0x283   : > { %v746_v4 = vadd.f32 %v745_v60, %v532_v12 }
 0x287   : > { %878 = vmatmul.f32.gmra.mxu3 %v671_v41  ;;  %795 = vmatmul.f32.gmra.mxu2 %v690_v26  ;;  %v699_v26 = vld [vmem:[%s1925_s1 + $0x1d8] sm:$0xff] }
 0x28a   : > { %v748_v34 = vpop.f32.mrf.mxu2  ;;  %600 = vmatmul.f32.gmra.mxu1 %v1569_v32 }
 0x28f   : > { %881 = vmatmul.f32.gmra.mxu3 %v673_v48  ;;  %798 = vmatmul.f32.gmra.mxu2 %v692_v36 }
 0x292   : > { %v834_v49 = vpop.f32.mrf.mxu3  ;;  %v751_v41 = vpop.f32.mrf.mxu2 }
 0x293   : > { %v835_v20 = vadd.f32 %v834_v49, %v722_v0  ;;  %v541_v0 = vpop.f32.mrf.mxu1 }
 0x295   : > { %v934_v18 = vmax.f32 %v835_v20, %v1783_v2  ;;  %v696_v20 = vld [vmem:[%s1925_s1 + $0x1c0] sm:$0xff] }
 0x297   : > { %966 = vst [vmem:[#allocation9] sm:$0xff] %v934_v18  ;;  %884 = vmatmul.f32.gmra.mxu3 %v675_v7  ;;  %801 = vmatmul.f32.gmra.mxu2 %v694_v43 }
 0x29a   : > { %v837_v42 = vpop.f32.mrf.mxu3  ;;  %v754_v24 = vpop.f32.mrf.mxu2 }
 0x29b   : > { %v838_v51 = vadd.f32 %v837_v42, %v725_v50  ;;  %v544_v18 = vpop.f32.mrf.mxu1  ;;  %v698_v42 = vld [vmem:[%s1925_s1 + $0x1d0] sm:$0xff] }
 0x29d   : > { %v935_v37 = vmax.f32 %v838_v51, %v1783_v2 }
 0x29f   : > { %967 = vst [vmem:[#allocation9 + $0x8] sm:$0xff] %v935_v37  ;;  %887 = vmatmul.f32.gmra.mxu3 %v677_v9  ;;  %804 = vmatmul.f32.gmra.mxu2 %v696_v20  ;;  %v749_v9 = vadd.f32 %v748_v34, %v535_v33 }
 0x2a2   : > { %v840_v31 = vpop.f32.mrf.mxu3  ;;  %v757_v50 = vpop.f32.mrf.mxu2 }
 0x2a3   : > { %v841_v54 = vadd.f32 %v840_v31, %v728_v52  ;;  %v547_v30 = vpop.f32.mrf.mxu1  ;;  %v758_v12 = vadd.f32 %v757_v50, %v544_v18 }
 0x2a5   : > { %v936_v55 = vmax.f32 %v841_v54, %v1783_v2  ;;  %v752_v54 = vadd.f32 %v751_v41, %v538_v40 }
 0x2a7   : > { %968 = vst [vmem:[#allocation9 + $0x10] sm:$0xff] %v936_v55  ;;  %890 = vmatmul.f32.gmra.mxu3 %v679_v11  ;;  %807 = vmatmul.f32.gmra.mxu2 %v698_v42 }
 0x2aa   : > { %v843_v57 = vpop.f32.mrf.mxu3  ;;  %v760_v37 = vpop.f32.mrf.mxu2 }
 0x2ab   : > { %v844_v16 = vadd.f32 %v843_v57, %v731_v45  ;;  %v550_v11 = vpop.f32.mrf.mxu1  ;;  %v755_v57 = vadd.f32 %v754_v24, %v541_v0  ;;  %v761_v32 = vadd.f32 %v760_v37, %v547_v30 }
 0x2ad   : > { %v937_v14 = vmax.f32 %v844_v16, %v1783_v2 }
 0x2af   : > { %969 = vst [vmem:[#allocation9 + $0x18] sm:$0xff] %v937_v14  ;;  %893 = vmatmul.f32.gmra.mxu3 %v681_v13  ;;  %810 = vmatmul.f32.gmra.mxu2 %v700_v53 }
 0x2b2   : > { %v846_v8 = vpop.f32.mrf.mxu3  ;;  %v763_v44 = vpop.f32.mrf.mxu2 }
 0x2b3   : > { %v847_v61 = vadd.f32 %v846_v8, %v734_v59  ;;  %v553_v16 = vpop.f32.mrf.mxu1  ;;  %v764_v36 = vadd.f32 %v763_v44, %v550_v11 }
 0x2b5   : > { %v938_v28 = vmax.f32 %v847_v61, %v1783_v2 }
 0x2b7   : > { %970 = vst [vmem:[#allocation9 + $0x20] sm:$0xff] %v938_v28  ;;  %896 = vmatmul.f32.gmra.mxu3 %v683_v15  ;;  %813 = vmatmul.f32.gmra.mxu2 %v702_v56 }
 0x2ba   : > { %v849_v63 = vpop.f32.mrf.mxu3  ;;  %v766_v13 = vpop.f32.mrf.mxu2 }
 0x2bb   : > { %v850_v35 = vadd.f32 %v849_v63, %v737_v62  ;;  %v556_v60 = vpop.f32.mrf.mxu1 }
 0x2bd   : > { %v939_v1 = vmax.f32 %v850_v35, %v1783_v2  ;;  %v701_v35 = vld [vmem:[%s1925_s1 + $0x1e8] sm:$0xff] }
 0x2bf   : > { %971 = vst [vmem:[#allocation9 + $0x28] sm:$0xff] %v939_v1  ;;  %899 = vmatmul.f32.gmra.mxu3 %v685_v17 }
 0x2c2   : > { %v852_v3 = vpop.f32.mrf.mxu3  ;;  %v769_v8 = vpop.f32.mrf.mxu2 }
 0x2c3   : > { %v853_v38 = vadd.f32 %v852_v3, %v740_v39  ;;  %v559_v62 = vpop.f32.mrf.mxu1  ;;  %v703_v3 = vld [vmem:[%s1925_s1 + $0x1f8] sm:$0xff] }
 0x2c5   : > { %v940_v48 = vmax.f32 %v853_v38, %v1783_v2 }
 0x2c7   : > { %972 = vst [vmem:[#allocation9 + $0x30] sm:$0xff] %v940_v48  ;;  %902 = vmatmul.f32.gmra.mxu3 %v687_v19  ;;  %v767_v19 = vadd.f32 %v766_v13, %v553_v16 }
 0x2ca   : > { %v855_v22 = vpop.f32.mrf.mxu3  ;;  %v772_v33 = vpop.f32.mrf.mxu2 }
 0x2cb   : > { %v856_v49 = vadd.f32 %v855_v22, %v743_v5  ;;  %v562_v1 = vpop.f32.mrf.mxu1  ;;  %v770_v22 = vadd.f32 %v769_v8, %v556_v60  ;;  %v773_v18 = vadd.f32 %v772_v33, %v559_v62 }
 0x2cd   : > { %v941_v7 = vmax.f32 %v856_v49, %v1783_v2 }
 0x2cf   : > { %973 = vst [vmem:[#allocation9 + $0x38] sm:$0xff] %v941_v7  ;;  %905 = vmatmul.f32.gmra.mxu3 %v689_v21 }
 0x2d2   : > { %v858_v6 = vpop.f32.mrf.mxu3  ;;  %v775_v40 = vpop.f32.mrf.mxu2 }
 0x2d3   : > { %v859_v10 = vadd.f32 %v858_v6, %v746_v4  ;;  %v565_v5 = vpop.f32.mrf.mxu1 }
 0x2d5   : > { %v942_v51 = vmax.f32 %v859_v10, %v1783_v2 }
 0x2d7   : > { %974 = vst [vmem:[#allocation9 + $0x40] sm:$0xff] %v942_v51  ;;  %908 = vmatmul.f32.gmra.mxu3 %v691_v23  ;;  %v776_v23 = vadd.f32 %v775_v40, %v562_v1 }
 0x2da   : > { %v861_v52 = vpop.f32.mrf.mxu3  ;;  %v778_v0 = vpop.f32.mrf.mxu2 }
 0x2db   : > { %v862_v47 = vadd.f32 %v861_v52, %v749_v9  ;;  %v568_v7 = vpop.f32.mrf.mxu1  ;;  %v779_v52 = vadd.f32 %v778_v0, %v565_v5 }
 0x2dd   : > { %v943_v31 = vmax.f32 %v862_v47, %v1783_v2 }
 0x2df   : > { %975 = vst [vmem:[#allocation9 + $0x48] sm:$0xff] %v943_v31  ;;  %911 = vmatmul.f32.gmra.mxu3 %v693_v25 }
 0x2e2   : > { %v864_v55 = vpop.f32.mrf.mxu3  ;;  %v781_v4 = vpop.f32.mrf.mxu2 }
 0x2e3   : > { %v865_v45 = vadd.f32 %v864_v55, %v752_v54  ;;  %v571_v42 = vpop.f32.mrf.mxu1  ;;  %v782_v11 = vadd.f32 %v781_v4, %v568_v7 }
 0x2e5   : > { %v944_v46 = vmax.f32 %v865_v45, %v1783_v2 }
 0x2e7   : > { %976 = vst [vmem:[#allocation9 + $0x50] sm:$0xff] %v944_v46  ;;  %914 = vmatmul.f32.gmra.mxu3 %v695_v27 }
 0x2ea   : > { %v867_v58 = vpop.f32.mrf.mxu3  ;;  %v784_v51 = vpop.f32.mrf.mxu2 }
 0x2eb   : > { %v868_v14 = vadd.f32 %v867_v58, %v755_v57  ;;  %v574_v47 = vpop.f32.mrf.mxu1  ;;  %v785_v46 = vadd.f32 %v784_v51, %v571_v42 }
 0x2ed   : > { %v945_v59 = vmax.f32 %v868_v14, %v1783_v2 }
 0x2ef   : > { %977 = vst [vmem:[#allocation9 + $0x58] sm:$0xff] %v945_v59  ;;  %917 = vmatmul.f32.gmra.mxu3 %v697_v29 }
 0x2f2   : > { %v870_v61 = vpop.f32.mrf.mxu3  ;;  %v787_v53 = vpop.f32.mrf.mxu2 }
 0x2f3   : > { %v871_v15 = vadd.f32 %v870_v61, %v758_v12  ;;  %v577_v45 = vpop.f32.mrf.mxu1  ;;  %v788_v29 = vadd.f32 %v787_v53, %v574_v47 }
 0x2f5   : > { %v946_v28 = vmax.f32 %v871_v15, %v1783_v2 }
 0x2f7   : > { %978 = vst [vmem:[#allocation9 + $0x60] sm:$0xff] %v946_v28  ;;  %920 = vmatmul.f32.gmra.mxu3 %v699_v26 }
 0x2fa   : > { %v873_v34 = vpop.f32.mrf.mxu3  ;;  %v790_v27 = vpop.f32.mrf.mxu2 }
 0x2fb   : > { %v874_v63 = vadd.f32 %v873_v34, %v761_v32  ;;  %v580_v58 = vpop.f32.mrf.mxu1  ;;  %v791_v8 = vadd.f32 %v790_v27, %v577_v45 }
 0x2fd   : > { %v947_v17 = vmax.f32 %v874_v63, %v1783_v2 }
 0x2ff   : > { %979 = vst [vmem:[#allocation9 + $0x68] sm:$0xff] %v947_v17  ;;  %923 = vmatmul.f32.gmra.mxu3 %v701_v35 }
 0x302   : > { %v876_v39 = vpop.f32.mrf.mxu3  ;;  %v793_v14 = vpop.f32.mrf.mxu2 }
 0x303   : > { %v877_v41 = vadd.f32 %v876_v39, %v764_v36  ;;  %v583_v61 = vpop.f32.mrf.mxu1  ;;  %v794_v62 = vadd.f32 %v793_v14, %v580_v58 }
 0x305   : > { %v948_v38 = vmax.f32 %v877_v41, %v1783_v2 }
 0x307   : > { %980 = vst [vmem:[#allocation9 + $0x70] sm:$0xff] %v948_v38  ;;  %926 = vmatmul.f32.gmra.mxu3 %v703_v3 }
 0x30a   : > { %v879_v43 = vpop.f32.mrf.mxu3  ;;  %v796_v15 = vpop.f32.mrf.mxu2 }
 0x30b   : > { %v880_v48 = vadd.f32 %v879_v43, %v767_v19  ;;  %v586_v33 = vpop.f32.mrf.mxu1  ;;  %v797_v36 = vadd.f32 %v796_v15, %v583_v61 }
 0x30d   : > { %v949_v24 = vmax.f32 %v880_v48, %v1783_v2 }
 0x30f   : > { %981 = vst [vmem:[#allocation9 + $0x78] sm:$0xff] %v949_v24 }
 0x312   : > { %v882_v49 = vpop.f32.mrf.mxu3  ;;  %v799_v63 = vpop.f32.mrf.mxu2 }
 0x313   : > { %v883_v21 = vadd.f32 %v882_v49, %v770_v22  ;;  %v589_v40 = vpop.f32.mrf.mxu1  ;;  %v800_v38 = vadd.f32 %v799_v63, %v586_v33 }
 0x315   : > { %v950_v20 = vmax.f32 %v883_v21, %v1783_v2 }
 0x317   : > { %982 = vst [vmem:[#allocation9 + $0x80] sm:$0xff] %v950_v20 }
 0x31a   : > { %v885_v50 = vpop.f32.mrf.mxu3  ;;  %v802_v41 = vpop.f32.mrf.mxu2 }
 0x31b   : > { %v886_v6 = vadd.f32 %v885_v50, %v773_v18  ;;  %v592_v5 = vpop.f32.mrf.mxu1  ;;  %v803_v24 = vadd.f32 %v802_v41, %v589_v40 }
 0x31d   : > { %v951_v10 = vmax.f32 %v886_v6, %v1783_v2 }
 0x31f   : > { %983 = vst [vmem:[#allocation9 + $0x88] sm:$0xff] %v951_v10 }
 0x322   : > { %v888_v9 = vpop.f32.mrf.mxu3  ;;  %v805_v0 = vpop.f32.mrf.mxu2 }
 0x323   : > { %v889_v30 = vadd.f32 %v888_v9, %v776_v23  ;;  %v806_v20 = vadd.f32 %v805_v0, %v592_v5  ;;  %v595_v7 = vpop.f32.mrf.mxu1 }
 0x325   : > { %v952_v37 = vmax.f32 %v889_v30, %v1783_v2 }
 0x327   : > { %984 = vst [vmem:[#allocation9 + $0x90] sm:$0xff] %v952_v37 }
 0x32a   : > { %v891_v25 = vpop.f32.mrf.mxu3  ;;  %v808_v4 = vpop.f32.mrf.mxu2 }
 0x32b   : > { %v892_v31 = vadd.f32 %v891_v25, %v779_v52  ;;  %v809_v10 = vadd.f32 %v808_v4, %v595_v7  ;;  %v598_v23 = vpop.f32.mrf.mxu1 }
 0x32d   : > { %v953_v54 = vmax.f32 %v892_v31, %v1783_v2 }
 0x32f   : > { %985 = vst [vmem:[#allocation9 + $0x98] sm:$0xff] %v953_v54 }
 0x332   : > { %v894_v44 = vpop.f32.mrf.mxu3  ;;  %v811_v51 = vpop.f32.mrf.mxu2 }
 0x333   : > { %v895_v55 = vadd.f32 %v894_v44, %v782_v11  ;;  %v812_v37 = vadd.f32 %v811_v51, %v598_v23  ;;  %v601_v25 = vpop.f32.mrf.mxu1 }
 0x335   : > { %v954_v56 = vmax.f32 %v895_v55, %v1783_v2 }
 0x337   : > { %986 = vst [vmem:[#allocation9 + $0xa0] sm:$0xff] %v954_v56 }
 0x33a   : > { %v897_v57 = vpop.f32.mrf.mxu3  ;;  %v814_v53 = vpop.f32.mrf.mxu2 }
 0x33b   : > { %v898_v16 = vadd.f32 %v897_v57, %v785_v46  ;;  %v815_v54 = vadd.f32 %v814_v53, %v601_v25 }
 0x33d   : > { %v955_v13 = vmax.f32 %v898_v16, %v1783_v2 }
 0x33f   : > { %987 = vst [vmem:[#allocation9 + $0xa8] sm:$0xff] %v955_v13 }
 0x342   : > { %v900_v59 = vpop.f32.mrf.mxu3 }
 0x343   : > { %v901_v12 = vadd.f32 %v900_v59, %v788_v29 }
 0x345   : > { %v956_v60 = vmax.f32 %v901_v12, %v1783_v2 }
 0x347   : > { %988 = vst [vmem:[#allocation9 + $0xb0] sm:$0xff] %v956_v60 }
 0x34a   : > { %v903_v26 = vpop.f32.mrf.mxu3 }
 0x34b   : > { %v904_v28 = vadd.f32 %v903_v26, %v791_v8 }
 0x34d   : > { %v957_v32 = vmax.f32 %v904_v28, %v1783_v2 }
 0x34f   : > { %989 = vst [vmem:[#allocation9 + $0xb8] sm:$0xff] %v957_v32 }
 0x352   : > { %v906_v34 = vpop.f32.mrf.mxu3 }
 0x353   : > { %v907_v35 = vadd.f32 %v906_v34, %v794_v62 }
 0x355   : > { %v958_v17 = vmax.f32 %v907_v35, %v1783_v2 }
 0x357   : > { %990 = vst [vmem:[#allocation9 + $0xc0] sm:$0xff] %v958_v17 }
 0x35a   : > { %v909_v1 = vpop.f32.mrf.mxu3 }
 0x35b   : > { %v910_v39 = vadd.f32 %v909_v1, %v797_v36 }
 0x35d   : > { %v959_v3 = vmax.f32 %v910_v39, %v1783_v2 }
 0x35f   : > { %991 = vst [vmem:[#allocation9 + $0xc8] sm:$0xff] %v959_v3 }
 0x362   : > { %v912_v19 = vpop.f32.mrf.mxu3 }
 0x363   : > { %v913_v43 = vadd.f32 %v912_v19, %v800_v38 }
 0x365   : > { %v960_v48 = vmax.f32 %v913_v43, %v1783_v2 }
 0x367   : > { %992 = vst [vmem:[#allocation9 + $0xd0] sm:$0xff] %v960_v48 }
 0x36a   : > { %v915_v22 = vpop.f32.mrf.mxu3 }
 0x36b   : > { %v916_v49 = vadd.f32 %v915_v22, %v803_v24 }
 0x36d   : > { %v961_v21 = vmax.f32 %v916_v49, %v1783_v2 }
 0x36f   : > { %993 = vst [vmem:[#allocation9 + $0xd8] sm:$0xff] %v961_v21 }
 0x372   : > { %v918_v18 = vpop.f32.mrf.mxu3 }
 0x373   : > { %v919_v50 = vadd.f32 %v918_v18, %v806_v20 }
 0x375   : > { %v962_v6 = vmax.f32 %v919_v50, %v1783_v2 }
 0x377   : > { %994 = vst [vmem:[#allocation9 + $0xe0] sm:$0xff] %v962_v6 }
 0x37a   : > { %v921_v42 = vpop.f32.mrf.mxu3 }
 0x37b   : > { %v922_v9 = vadd.f32 %v921_v42, %v809_v10 }
 0x37d   : > { %v963_v30 = vmax.f32 %v922_v9, %v1783_v2 }
 0x37f   : > { %995 = vst [vmem:[#allocation9 + $0xe8] sm:$0xff] %v963_v30 }
 0x382   : > { %v924_v52 = vpop.f32.mrf.mxu3 }
 0x383   : > { %v925_v47 = vadd.f32 %v924_v52, %v812_v37 }
 0x385   : > { %v964_v31 = vmax.f32 %v925_v47, %v1783_v2 }
 0x387   : > { %996 = vst [vmem:[#allocation9 + $0xf0] sm:$0xff] %v964_v31 }
 0x38a   : > { %v927_v11 = vpop.f32.mrf.mxu3 }
 0x38b   : > { %v928_v44 = vadd.f32 %v927_v11, %v815_v54 }
 0x38d   : > { %v965_v55 = vmax.f32 %v928_v44, %v1783_v2 }
 0x38f   : > { %997 = vst [vmem:[#allocation9 + $0xf8] sm:$0xff] %v965_v55 }
 0x390   : > { %1101 = dma.vmem_to_hbm [thread:$0]  (%p1115_p4), %s1004_s7, 4096, %s1006_s11, [#allocation6], %s1312_s12, %s1312_s12, %s1313_s14  }
 0x391   : > { %1286 = dma.done.wait (%p1115_p4), [#allocation6], 4096  }
 0x392   : > { %1288 = vsyncadd (%p1115_p4), [#allocation6], 4294963200 }
 0x393 PF: > { %p25_p5 = scmp.ge.s32.totalorder %s1391_s8, 4   ;;  %s1933_s22 = smov %s1295_s23 }
 0x394   : > { %s1934_s23 = smov %s1299_s24  ;;  %s1935_s24 = smov %s1401_s13 }
 0x395   : > { %s1936_s25 = smov %s1391_s8  ;;  %27 = sbr.rel (!%p25_p5) target bundleno = 11 (0xb), region = 84 }
 0x39a   :  { %1022 = vsyncpa [#allocation5], 1 }
 0x39b   :  { %1024 = vsyncpa [#allocation5 + $0x1], 1 }
 0x39c   :  { %1025 = vsyncpa [#allocation8], 1 }
 0x39d   :  { %1026 = vsyncpa [#allocation6], 1 }
 0x39e   :  { %1028 = vsyncpa [#allocation6 + $0x1], 1 }

</bundles_post_ra>
